<compile_context>
chip_gen: v7x
topology: tpu7x:2x2x1
jax: 0.10.0
libtpu: 0.0.40
codegen_flags: <defaults>
</compile_context>

<pallas_src>
import jax
import jax.numpy as jnp
from jax.experimental import pallas as pl
from jax.experimental.pallas import tpu as pltpu


_MIN_GRID_STEPS = 4  # feed both v7x TensorCores / amortize per-step overhead


def _quantize_kernel(v_ref, o_ref):
    # (video * 255).byte(): scale, clamp (guards out-of-range inputs; no-op for
    # the in-range [0,1] frames this module feeds ffmpeg), truncate-cast to u8.
    x = v_ref[...] * 255.0
    x = jnp.clip(x, 0.0, 255.0)
    o_ref[...] = x.astype(jnp.uint8)


def _pick_2d_shape(total_elems: int, natural_w: int):
    """Pick a lane-dense 2D view (rows, lane) of the flat element stream.

    The op is index-free, so ANY factorization rows*lane == total is valid.
    Prefer the widest lane dim that is a multiple of 128 (unmasked vst path),
    while leaving enough rows to tile/grid over; fall back to the natural
    (T*C*H, W) view (masked trailing lanes) if nothing divides evenly.
    """
    for min_rows in (128, 32, 8):
        best = 0
        lane = 128
        while lane <= 4096 and lane * min_rows <= total_elems:
            if total_elems % lane == 0:
                best = lane
            lane += 128
        if best:
            return total_elems // best, best
    return total_elems // natural_w, natural_w


def _pick_rows_per_tile(rows: int, lane_w: int, target_tile_bytes: int) -> int:
    """Rows per tile: multiple of 32 (uint8 packs 4 rows/sublane -> full (8,128)
    native tiles for the packed output), sized from the f32 tile byte budget."""
    rows_per_tile = max(32, (target_tile_bytes // (lane_w * 4)) // 32 * 32)
    # Don't exceed the row count (keep blocks no larger than the array when the
    # array has at least one full 32-row group; partial last blocks are fine).
    rows_per_tile = min(rows_per_tile, max(32, (rows // 32) * 32))
    # Guarantee a multi-step grid so the "parallel" axis can use both v7x TCs.
    if pl.cdiv(rows, rows_per_tile) < _MIN_GRID_STEPS and rows >= _MIN_GRID_STEPS * 32:
        rows_per_tile = max(32, pl.cdiv(pl.cdiv(rows, _MIN_GRID_STEPS), 32) * 32)
    return rows_per_tile


def _tile_and_vmem_budget():
    """Generation-aware (v5e/v6e: 128 MiB VMEM, v7x: 64 MiB/TC) tile + limit."""
    try:
        vmem_cap = int(pltpu.get_tpu_info().vmem_capacity_bytes)
    except Exception:
        vmem_cap = 64 * 1024 * 1024  # conservative (v7x per-core) fallback
    # Double-buffered f32 input + u8 output ~= 2.5x the f32 tile bytes.
    target_tile_bytes = min(16 * 1024 * 1024, vmem_cap // 6)
    vmem_limit = min(int(0.75 * vmem_cap), 4 * target_tile_bytes)
    return target_tile_bytes, vmem_limit


def mpeg4_quantize_frames(video: jax.Array, *, target_tile_bytes: int | None = None) -> jax.Array:
    """video: float32 NCHW (T, C, H, W) in [0, 1].

    Returns uint8 NHWC frames (T, H, W, C) -- the rgb24 byte stream the original
    module pipes into ffmpeg.
    """
    T, C, H, W = video.shape
    total = T * C * H * W

    auto_tile, vmem_limit = _tile_and_vmem_budget()
    if target_tile_bytes is None:
        target_tile_bytes = auto_tile

    # Lane-dense flat 2D view (free reshape of a contiguous array).
    rows, lane_w = _pick_2d_shape(total, W)
    flat = video.reshape(rows, lane_w)

    rows_per_tile = _pick_rows_per_tile(rows, lane_w, target_tile_bytes)
    n_tiles = pl.cdiv(rows, rows_per_tile)

    out_flat = pl.pallas_call(
        _quantize_kernel,
        out_shape=jax.ShapeDtypeStruct((rows, lane_w), jnp.uint8),
        grid=(n_tiles,),
        in_specs=[pl.BlockSpec((rows_per_tile, lane_w), lambda i: (i, 0))],
        out_specs=pl.BlockSpec((rows_per_tile, lane_w), lambda i: (i, 0)),
        compiler_params=pltpu.CompilerParams(
            dimension_semantics=("parallel",),
            vmem_limit_bytes=vmem_limit,
        ),
        # HBM-bound: 4 B/elem f32 read + 1 B/elem u8 write; ~3 VPU ops/elem.
        cost_estimate=pl.CostEstimate(
            flops=3 * total, transcendentals=0, bytes_accessed=5 * total),
    )(flat)

    out_nchw = out_flat.reshape(T, C, H, W)

    # NCHW -> NHWC layout pass on the quantized bytes (see TODO(synk) above for
    # why this interleave is not fused into the kernel).
    return jnp.transpose(out_nchw, (0, 2, 3, 1))


if __name__ == "__main__":
    key = jax.random.PRNGKey(0)
    # Small, deterministic examples covering the three tiling paths:
    #   - W multiple of 128 (natural lane-dense view)
    #   - W not a multiple of 128 but total refactors to a 128-multiple lane dim
    #   - no 128-multiple factorization exists (masked-lane fallback)
    shapes = [(4, 3, 32, 128), (2, 3, 16, 96), (2, 3, 24, 100)]
    for idx, (T, C, H, W) in enumerate(shapes):
        k = jax.random.fold_in(key, idx)
        video = jax.random.uniform(k, (T, C, H, W), dtype=jnp.float32)

        frames = mpeg4_quantize_frames(video)
        jax.block_until_ready(frames)

        # Reference semantics: (video * 255).byte() then NCHW -> NHWC.
        ref = jnp.transpose((video * 255.0).astype(jnp.uint8), (0, 2, 3, 1))
        assert frames.shape == (T, H, W, C), frames.shape
        assert frames.dtype == jnp.uint8
        assert bool(jnp.all(frames == ref)), f"mismatch for shape {(T, C, H, W)}"

    print("KERNEL_OK")
</pallas_src>

<mosaic_0001>
module attributes {stable_mosaic.version = 11 : i64} {
  func.func @_quantize_kernel(%arg0: i32, %arg1: memref<32x384xf32, #tpu.memory_space<vmem>>, %arg2: memref<32x384xi8, #tpu.memory_space<vmem>>) attributes {dimension_semantics = [#tpu.dimension_semantics<parallel>], iteration_bounds = array<i64: 4>, scalar_prefetch = 0 : i64, scratch_operands = 0 : i64, tpu.core_type = #tpu.core_type<tc>, window_params = [{transform_indices = @transform_0, window_bounds = array<i64: 32, 384>}, {transform_indices = @transform_1, window_bounds = array<i64: 32, 384>}]} {
    %c0 = arith.constant 0 : index
    %c0_0 = arith.constant 0 : index
    %0 = vector.load %arg1[%c0, %c0_0] : memref<32x384xf32, #tpu.memory_space<vmem>>, vector<32x384xf32>
    %cst = arith.constant 2.550000e+02 : f32
    %1 = vector.broadcast %cst : f32 to vector<32x384xf32>
    %2 = arith.mulf %0, %1 : vector<32x384xf32>
    %cst_1 = arith.constant 0.000000e+00 : f32
    %cst_2 = arith.constant 2.550000e+02 : f32
    %3 = vector.broadcast %cst_1 : f32 to vector<32x384xf32>
    %4 = arith.maximumf %3, %2 : vector<32x384xf32>
    %5 = vector.broadcast %cst_2 : f32 to vector<32x384xf32>
    %6 = arith.minimumf %5, %4 : vector<32x384xf32>
    %7 = arith.fptoui %6 : vector<32x384xf32> to vector<32x384xi8>
    %c0_3 = arith.constant 0 : index
    %c0_4 = arith.constant 0 : index
    %8 = vector.load %arg2[%c0_3, %c0_4] : memref<32x384xi8, #tpu.memory_space<vmem>>, vector<32x384xi8>
    tpu.vector_store %arg2[%c0_3, %c0_4], %7 {strides = array<i32>} : memref<32x384xi8, #tpu.memory_space<vmem>>, vector<32x384xi8>,
    return
  }
  func.func @transform_0(%arg0: i32) -> (i32, i32) {
    %c0_i32 = arith.constant 0 : i32
    %c0_i32_0 = arith.constant 0 : i32
    return %arg0, %c0_i32 : i32, i32
  }
  func.func @transform_1(%arg0: i32) -> (i32, i32) {
    %c0_i32 = arith.constant 0 : i32
    %c0_i32_0 = arith.constant 0 : i32
    return %arg0, %c0_i32 : i32, i32
  }
}

</mosaic_0001>

<bundles_post_ra>
// kernel: tpu_custom_call.1
= control target key start
LH: loop header
LB: loop body
LE: loop exit
PB: predicated region body
PF: predicated region fallthrough
CT: control target
= control target key end

     0   :  { %6 = vsyncpa [#allocation3], 0  ;;  %s657_s0 = inlined_call_operand.hbm [shape: f32[128,384], index: 0, kind: input, shape index: {}]   ;;  %s658_s1 = inlined_call_operand.hbm [shape: u8[128,384], index: 1, kind: output, shape index: {}]  }
   0x1   :  { %8 = vsyncpa [#allocation3 + $0x1], 0 }
   0x2   :  { %9 = vsyncpa [#allocation4], 0 }
   0x3   :  { %11 = vsyncpa [#allocation4 + $0x1], 0  ;;  %s490_s6 = smov 0   ;;  %s492_s7 = smov 0  }
   0x4   :  { %s494_s8 = smov 0   ;;  %s496_s9 = smov 0  }
   0x5 LB: > { %s511_s10 = sadd.s32 4294967295, %s474_s9   ;;  %s315_s11 = sadd.s32 4294967294, %s474_s9   ;;  %s474_s9 = sphi %s496_s9, %s669_s9   ;;  %s470_s8 = sphi %s494_s8, %s668_s8   ;;  %s466_s7 = sphi %s492_s7, %s667_s7   ;;  %s462_s6 = sphi %s490_s6, %s666_s6  }
   0x6   : > { %s515_s12 = sadd.s32 1, %s474_s9   ;;  %s24_s13 = sadd.s32 1, %s470_s8 }
   0x7   : > { %s21_s14 = ssub.s32 %s474_s9, %s515_s12  ;;  %p31_p0 = scmp.ne.s32.totalorder %s470_s8, %s466_s7 }
   0x8   : > { %p22_p1 = scmp.eq.s32.totalorder %s21_s14, 0  ;;  %p32_p2 = scmp.eq.s32.totalorder %s474_s9, 0 }
   0x9   : > { %p37_p3 = scmp.ne.s32.totalorder %s466_s7, %s462_s6  ;;  %p38_p4 = scmp.eq.s32.totalorder %s511_s10, 0 }
   0xa   : > { %s527_s15 = scalar_select %p22_p1, %s470_s8, %s24_s13  }
   0xb   : > { %p33_p5 = por %p32_p2, %p31_p0  ;;  %p529_p6 = por %p38_p4, %p37_p3 }
   0xc   : > { %p61_p7 = scmp.eq.s32.totalorder %s511_s10, 3  ;;  %p67_p8 = scmp.eq.s32.totalorder %s315_s11, 3 }
   0xd   : > { %p342_p9 = scmp.lt.s32.totalorder %s474_s9, 4  ;;  %s87_s19 = sand.u32 1, %s470_s8  }
   0xe   : > { %p535_p10 = por %p61_p7, %p31_p0  ;;  %p539_p11 = por %p67_p8, %p37_p3 }
   0xf   : > { %s326_s20 = smul.u32 1536, %s474_s9  ;;  %p550_p12 = pnand %p342_p9, %p33_p5 }
  0x10   : > { %s661_s17 = scalar_select %p535_p10, 1, 0 }
  0x11   : > { %s662_s18 = scalar_select %p539_p11, 1, 0 }
  0x12   : > { %s325_s21 = smul.u32 96, %s87_s19  ;;  %s548_s24 = scalar_lea.hbm %s657_s0, %s326_s20 }
  0x13   : > { %s556_s28 = scalar_lea.sflag [#allocation3], %s87_s19  ;;  %s378_s29 = scalar_lea.hbm %s548_s24, 1536 }
  0x14   : > { %s91_s26 = scalar_lea.vmem [#allocation2], %s325_s21  ;;  %p379_p13 = scmp.ne.s32.totalorder %s548_s24, %s378_s29 }
  0x15   : > { %s99_s27 = sshll.u32 %s91_s26, 4  ;;  %p380_p0 = pneg %p550_p12  ;;  %s554_s27 = int_to_ptr.vmem [resolvable:$true] %s99_s27 }
  0x16   : > { %s383_s3 = scalar_lea.hbm %s657_s0, 6144  ;;  %p384_p3 = scmp.lt.u32.totalorder %s548_s24, %s657_s0 }
  0x17   : > { %p381_p1 = pnand %p380_p0, %p379_p13  ;;  %p385_p4 = scmp.lt.u32.totalorder %s383_s3, %s378_s29 }
  0x18   : > { %p387_p7 = scmp.lt.u32.totalorder %s378_s29, %s548_s24 }
  0x19   : > { %p382_p2 = pneg %p381_p1  ;;  %p386_p5 = por %p385_p4, %p384_p3 }
  0x1b   : > { %p388_p8 = por %p387_p7, %p386_p5 }
  0x1d   : > { %p389_p9 = pnand %p388_p8, %p382_p2 }
  0x1f   : > { %392 = shalt.err (!%p389_p9)
}
  0x20   : > { %s393_s11 = scalar_lea.vmem %s554_s27, 1536  ;;  %s476_s13 = smov [#allocation2]  }
  0x21   : > { %p394_p13 = scmp.ne.s32.totalorder %s554_s27, %s393_s11  ;;  %s398_s14 = sshll.u32 %s476_s13, 4  ;;  %s399_s14 = int_to_ptr.vmem [resolvable:$false] %s398_s14 }
  0x22   : > { %s400_s19 = scalar_lea.vmem %s399_s14, 3072  ;;  %p401_p10 = scmp.lt.s32.totalorder %s554_s27, %s399_s14 }
  0x23   : > { %p396_p1 = pnand %p394_p13, %p380_p0  ;;  %p402_p3 = scmp.lt.s32.totalorder %s400_s19, %s393_s11 }
  0x25   : > { %p397_p11 = pneg %p396_p1  ;;  %p403_p4 = por %p402_p3, %p401_p10 }
  0x27   : > { %p404_p5 = pnand %p403_p4, %p397_p11 }
  0x29   : > { %407 = shalt.err (!%p404_p5)
}
  0x2a   : > { %s477_s20 = smov 384   ;;  %s478_s21 = smov 24  }
  0x2b   : > { %337 = dma.hbm_to_vmem [thread:$0]  (!%p550_p12), %s548_s24, 1536, %s554_s27, %s556_s28, %s477_s20, %s477_s20, %s478_s21  }
  0x2c   : > { %p321_p0 = scmp.ge.s32.totalorder %s474_s9, 1  ;;  %p107_p2 = scmp.lt.s32.totalorder %s474_s9, 5 }
  0x2e   : > { %p108_p7 = pnand %p321_p0, %p107_p2 }
  0x2f   : > { %s587_s22 = sand.u32 (!%p108_p7), 1, %s466_s7  }
  0x30   : > { %111 = sbr.rel (%p108_p7) target bundleno = 93 (0x5d), region = 24  ;;  %s114_s26 = scalar_lea.sflag (!%p108_p7), [#allocation3], %s587_s22 }
  0x31   : > { %s327_s23 = smul.u32 (!%p108_p7), 96, %s587_s22 }
  0x33   : > { %s591_s29 = scalar_lea.vmem (!%p108_p7), [#allocation2], %s327_s23 }
  0x37   : > { %453 = dma.done.wait (%p529_p6), %s114_s26, 1536  }
  0x38   : > { %455 = vsyncadd (%p529_p6), %s114_s26, 4294965760  ;;  %v137_v0 = vld [vmem:[%s591_s29] sm:$0xff]  ;;  %v140_v1 = vld [vmem:[%s591_s29 + $0x18] sm:$0xff]  ;;  %s328_s16 = smul.u32 24, %s587_s22  ;;  %s231_s3 = scalar_lea.sflag [#allocation4], %s587_s22 }
  0x39   : > { %v143_v2 = vld [vmem:[%s591_s29 + $0x30] sm:$0xff]  ;;  %v146_v3 = vld [vmem:[%s591_s29 + $0x48] sm:$0xff]  ;;  %v149_v4 = vmul.f32 255.0, %v137_v0  ;;  %v152_v5 = vmul.f32 255.0, %v140_v1  ;;  %v141_v8 = vld [vmem:[%s591_s29 + $0x20] sm:$0xff]  ;;  %s329_s25 = smul.u32 384, %s511_s10 }
  0x3a   : > { %v155_v6 = vmul.f32 255.0, %v143_v2  ;;  %v138_v7 = vld [vmem:[%s591_s29 + $0x8] sm:$0xff]  ;;  %v158_v9 = vmul.f32 255.0, %v146_v3  ;;  %v144_v10 = vld [vmem:[%s591_s29 + $0x38] sm:$0xff]  ;;  %v147_v11 = vld [vmem:[%s591_s29 + $0x50] sm:$0xff]  ;;  %v153_v13 = vmul.f32 255.0, %v141_v8 }
  0x3b   : > { %v150_v12 = vmul.f32 255.0, %v138_v7  ;;  %v161_v14 = vmax.f32 %v149_v4, 0.0  ;;  %v164_v15 = vmax.f32 %v152_v5, 0.0  ;;  %v156_v17 = vmul.f32 255.0, %v144_v10  ;;  %v139_v30 = vld [vmem:[%s591_s29 + $0x10] sm:$0xff]  ;;  %v142_v31 = vld [vmem:[%s591_s29 + $0x28] sm:$0xff]  ;;  %s616_s2 = scalar_lea.hbm %s658_s1, %s329_s25 }
  0x3c   : > { %v167_v16 = vmax.f32 %v155_v6, 0.0  ;;  %v170_v18 = vmax.f32 %v158_v9, 0.0  ;;  %v159_v19 = vmul.f32 255.0, %v147_v11  ;;  %v165_v21 = vmax.f32 %v153_v13, 0.0  ;;  %v145_v36 = vld [vmem:[%s591_s29 + $0x40] sm:$0xff]  ;;  %v148_v41 = vld [vmem:[%s591_s29 + $0x58] sm:$0xff] }
  0x3d   : > { %v162_v20 = vmax.f32 %v150_v12, 0.0  ;;  %v173_v22 = vmin.f32 %v161_v14, 255.0  ;;  %v176_v23 = vmin.f32 %v164_v15, 255.0  ;;  %v168_v25 = vmax.f32 %v156_v17, 0.0  ;;  %s135_s24 = scalar_lea.vmem [#allocation5], %s328_s16  ;;  %p664_p10 = scmp.ne.s32.totalorder %s661_s17, 0 }
  0x3e   : > { %v179_v24 = vmin.f32 %v167_v16, 255.0  ;;  %v182_v26 = vmin.f32 %v170_v18, 255.0  ;;  %v171_v27 = vmax.f32 %v159_v19, 0.0  ;;  %v177_v29 = vmin.f32 %v165_v21, 255.0  ;;  %s245_s27 = sshll.u32 %s135_s24, 4  ;;  %s479_s10 = smov [#allocation5]   ;;  %s611_s27 = int_to_ptr.vmem [resolvable:$true] %s245_s27 }
  0x3f   : > { %v174_v28 = vmin.f32 %v162_v20, 255.0  ;;  %v185_v32 = vtrunc.f32 %v173_v22  ;;  %v188_v33 = vtrunc.f32 %v176_v23  ;;  %v180_v35 = vmin.f32 %v168_v25, 255.0  ;;  %s408_s4 = scalar_lea.vmem %s611_s27, 384  ;;  %s412_s5 = sshll.u32 %s479_s10, 4  ;;  %s413_s5 = int_to_ptr.vmem [resolvable:$false] %s412_s5 }
  0x40   : > { %v191_v34 = vtrunc.f32 %v179_v24  ;;  %v194_v37 = vtrunc.f32 %v182_v26  ;;  %v183_v38 = vmin.f32 %v171_v27, 255.0  ;;  %v189_v40 = vtrunc.f32 %v177_v29  ;;  %p409_p6 = scmp.ne.s32.totalorder %s611_s27, %s408_s4  ;;  %s414_s11 = scalar_lea.vmem %s413_s5, 768 }
  0x41   : > { %v186_v39 = vtrunc.f32 %v174_v28  ;;  %v197_v42 = vpack.c.f32.eXmY %v185_v32, %v188_v33, 56  ;;  %v192_v43 = vtrunc.f32 %v180_v35  ;;  %v151_v44 = vmul.f32 255.0, %v139_v30  ;;  %p415_p8 = scmp.lt.s32.totalorder %s611_s27, %s413_s5  ;;  %p416_p9 = scmp.lt.s32.totalorder %s414_s11, %s408_s4 }
  0x42   : > { %v154_v45 = vmul.f32 255.0, %v142_v31  ;;  %v201_v46 = vpack.c.f32.eXmY %v191_v34, %v194_v37, 56  ;;  %v195_v47 = vtrunc.f32 %v183_v38  ;;  %v157_v49 = vmul.f32 255.0, %v145_v36  ;;  %p410_p11 = pnand %p409_p6, %p664_p10 }
  0x43   : > { %v207_v48 = vpack.c.f32.eXmY %v186_v39, %v189_v40, 56  ;;  %v160_v50 = vmul.f32 255.0, %v148_v41  ;;  %v163_v51 = vmax.f32 %v151_v44, 0.0  ;;  %p417_p13 = por %p416_p9, %p415_p8 }
  0x44   : > { %v166_v52 = vmax.f32 %v154_v45, 0.0  ;;  %v205_v53 = vpack.c.b8 %v201_v46, %v197_v42  ;;  %v211_v54 = vpack.c.f32.eXmY %v192_v43, %v195_v47, 56  ;;  %v169_v55 = vmax.f32 %v157_v49, 0.0  ;;  %p411_p12 = pneg %p410_p11 }
  0x45   : > { %v172_v56 = vmax.f32 %v160_v50, 0.0  ;;  %v175_v57 = vmin.f32 %v163_v51, 255.0 }
  0x46   : > { %v178_v58 = vmin.f32 %v166_v52, 255.0  ;;  %227 = vst [vmem:[%s135_s24] sm:$0xff] %v205_v53  ;;  %v215_v59 = vpack.c.b8 %v211_v54, %v207_v48  ;;  %v181_v60 = vmin.f32 %v169_v55, 255.0  ;;  %p418_p1 = pnand %p417_p13, %p411_p12 }
  0x47   : > { %v184_v61 = vmin.f32 %v172_v56, 255.0  ;;  %v187_v62 = vtrunc.f32 %v175_v57 }
  0x48   : > { %v190_v63 = vtrunc.f32 %v178_v58  ;;  %228 = vst [vmem:[%s135_s24 + $0x8] sm:$0xff] %v215_v59  ;;  %v193_v0 = vtrunc.f32 %v181_v60 }
  0x49   : > { %v196_v1 = vtrunc.f32 %v184_v61 }
  0x4a   : > { %v217_v2 = vpack.c.f32.eXmY %v187_v62, %v190_v63, 56 }
  0x4b   : > { %v221_v3 = vpack.c.f32.eXmY %v193_v0, %v196_v1, 56 }
  0x4d   : > { %v225_v4 = vpack.c.b8 %v221_v3, %v217_v2 }
  0x4f   : > { %229 = vst [vmem:[%s135_s24 + $0x10] sm:$0xff] %v225_v4 }
  0x50   : > { %421 = shalt.err (!%p418_p1)
}
  0x51   : > { %s422_s13 = scalar_lea.hbm %s616_s2, 384  ;;  %s426_s20 = scalar_lea.hbm %s658_s1, 1536 }
  0x52   : > { %p423_p3 = scmp.ne.s32.totalorder %s616_s2, %s422_s13  ;;  %p427_p0 = scmp.lt.u32.totalorder %s616_s2, %s658_s1 }
  0x53   : > { %p428_p2 = scmp.lt.u32.totalorder %s426_s20, %s422_s13  ;;  %p430_p6 = scmp.lt.u32.totalorder %s422_s13, %s616_s2 }
  0x54   : > { %p424_p4 = pnand %p423_p3, %p664_p10 }
  0x55   : > { %p429_p7 = por %p428_p2, %p427_p0 }
  0x56   : > { %p425_p5 = pneg %p424_p4 }
  0x57   : > { %p431_p11 = por %p430_p6, %p429_p7 }
  0x59   : > { %p432_p12 = pnand %p431_p11, %p425_p5 }
  0x5b   : > { %435 = shalt.err (!%p432_p12)
}
  0x5c   : > { %332 = dma.vmem_to_hbm [thread:$0]  (%p664_p10), %s611_s27, 384, %s616_s2, %s231_s3  }
  0x5d PF: > { %p343_p8 = scmp.ge.s32.totalorder %s474_s9, 2  ;;  %s257_s23 = sand.u32 1, %s462_s6  }
  0x5e   : > { %p665_p9 = scmp.ne.s32.totalorder %s662_s18, 0  ;;  %s258_s26 = scalar_lea.sflag [#allocation4], %s257_s23 }
  0x60   : > { %p339_p13 = pnand %p343_p8, %p665_p9 }
  0x62   : > { %457 = dma.done.wait (!%p339_p13), %s258_s26, 384  }
  0x63   : > { %459 = vsyncadd (!%p339_p13), %s258_s26, 4294966912  ;;  %p14_p1 = scmp.ge.s32.totalorder %s515_s12, 6   ;;  %s666_s6 = smov %s466_s7 }
  0x64   : > { %s667_s7 = smov %s470_s8  ;;  %s668_s8 = smov %s527_s15 }
  0x65   : > { %s669_s9 = smov %s515_s12  ;;  %16 = sbr.rel (!%p14_p1) target bundleno = 5 (0x5), region = 69 }
  0x6c   :  { %263 = vsyncpa [#allocation3], 1 }
  0x6d   :  { %265 = vsyncpa [#allocation3 + $0x1], 1 }
  0x6e   :  { %266 = vsyncpa [#allocation4], 1 }
  0x6f   :  { %268 = vsyncpa [#allocation4 + $0x1], 1 }

</bundles_post_ra>
